<compile_context>
chip_gen: v5e
topology: v5e:2x2
jax: 0.10.0
libtpu: 0.0.40
codegen_flags: <defaults>
</compile_context>

<pallas_src>
import functools

import jax
import jax.numpy as jnp
import numpy as np
from jax.experimental import pallas as pl
from jax.experimental.pallas import tpu as pltpu


def _round_up(a, b):
    return (a + b - 1) // b * b


@functools.lru_cache(maxsize=None)
def _vmem_caps():
    """(double-buffered tile budget, scoped vmem limit) in bytes, per TPU generation."""
    try:
        cap = int(pltpu.get_tpu_info().vmem_capacity_bytes)
    except Exception:
        cap = 64 * 1024 * 1024  # assume smallest current gen (v7x: 64 MiB / TC)
    tile_budget = min(cap // 3, 40 * 1024 * 1024)    # v7x ~21 MiB, v5e/v6e 40 MiB
    vmem_limit = min(3 * cap // 4, 96 * 1024 * 1024)  # v7x 48 MiB, v5e/v6e 96 MiB
    return tile_budget, vmem_limit


def _pick_tiles(M, Kp, Ep, budget):
    # tn: keep the whole (padded) embed dim resident whenever the bf16 weight tile is
    # small enough -- it is then DMA'd exactly once.  Otherwise pick the largest
    # 128-multiple divisor of Ep that fits, so grid_j * tn == Ep exactly (never
    # truncates -> no silently-uncomputed output columns).
    tn = 128
    for cand in (Ep, 1024, 896, 768, 640, 512, 384, 256, 128):
        if cand <= Ep and Ep % cand == 0 and 2 * (Kp * cand * 2) <= budget // 2:
            tn = cand
            break

    # tm: powers of two (>=16 keeps bf16 sublanes fully packed); keep the
    # double-buffered footprint 2*(x + w + out) under budget; choose the candidate
    # minimizing padded rows + per-grid-step overhead (~64 rows equivalent / step).
    cands = []
    for t in (8, 16, 32, 64, 128, 256, 512, 1024, 2048):
        fp = 2 * (t * Kp * 2 + Kp * tn * 2 + t * tn * 4)
        if fp > budget:
            break
        cands.append(t)
    if not cands:
        cands = [8]
    tm = min(cands, key=lambda t: (_round_up(M, t) + 64 * (_round_up(M, t) // t), -t))

    # v7x has two TensorCores: keep >= 2 steps on the "parallel" M axis when there
    # is enough work to split (harmless on single-TC v5e/v6e).
    while tm > 16 and _round_up(M, tm) // tm < 2:
        tm //= 2
    return tm, tn


def _patch_embed_kernel(x_ref, w_ref, b_ref, o_ref):
    # x_ref: (tm, Kp) bf16, w_ref: (Kp, tn) bf16, b_ref: (1, tn) f32, o_ref: (tm, tn)
    acc = jnp.dot(x_ref[...], w_ref[...], preferred_element_type=jnp.float32)
    o_ref[...] = (acc + b_ref[...]).astype(o_ref.dtype)


@functools.partial(jax.jit, static_argnames=("patch_size", "out_dtype"))
def aud_patch_embed(x, weight, bias, patch_size, out_dtype=None):
    """
    x:      (B, C, H, W)   float32
    weight: (E, C, ph, pw) float32  (PyTorch Conv2d weight layout)
    bias:   (E,)           float32
    returns (B, num_patches, E) in `out_dtype` (default: x.dtype)
    """
    B, C, H, W = x.shape
    E = weight.shape[0]
    ph, pw = patch_size
    assert H % ph == 0 and W % pw == 0, "img_size must be divisible by patch_size"
    Hp, Wp = H // ph, W // pw
    P = Hp * Wp
    K = C * ph * pw
    M = B * P
    out_dtype = x.dtype if out_dtype is None else jnp.dtype(out_dtype)

    # --- tile / pad sizes (every grid axis divides its padded extent exactly) ---
    Kp = _round_up(K, 128)          # contraction dim: full 128 lanes into the MXU
    Ep = _round_up(E, 128)          # lane-dense output last dim (unmasked vst)
    budget, vmem_limit = _vmem_caps()
    tm, tn = _pick_tiles(M, Kp, Ep, budget)
    Mp = _round_up(M, tm)

    # --- glue: non-overlapping patch extraction, K ordered (c, kh, kw) like Conv2d ---
    # Cast to bf16 *before* the transpose so the one unavoidable HBM round trip of
    # the patch matrix is half-width; the M/K zero-pad folds into the same producer.
    # TODO(synk): fuse this extraction into the pallas_call itself (grid over (B, Hp)
    # reading x in its native layout, or CompilerParams(allow_input_fusion=...)) to
    # remove the remaining HBM round trip entirely.
    xp = x.astype(jnp.bfloat16).reshape(B, C, Hp, ph, Wp, pw)
    xp = xp.transpose(0, 2, 4, 1, 3, 5).reshape(M, K)
    xp = jnp.pad(xp, ((0, Mp - M), (0, Kp - K)))

    w2 = weight.astype(jnp.bfloat16).reshape(E, K).T            # (K, E), rows (c, kh, kw)
    w2 = jnp.pad(w2, ((0, Kp - K), (0, Ep - E)))
    b2 = jnp.pad(bias.astype(jnp.float32), (0, Ep - E)).reshape(1, Ep)

    grid = (Mp // tm, Ep // tn)     # tn divides Ep by construction

    cost = pl.CostEstimate(
        flops=2 * Mp * Kp * Ep,
        transcendentals=0,
        bytes_accessed=(2 * (Mp * Kp + Kp * Ep)
                        + Mp * Ep * jnp.dtype(out_dtype).itemsize + 4 * Ep),
    )

    out = pl.pallas_call(
        _patch_embed_kernel,
        out_shape=jax.ShapeDtypeStruct((Mp, Ep), out_dtype),
        grid=grid,
        in_specs=[
            pl.BlockSpec((tm, Kp), lambda i, j: (i, 0)),   # patch rows: tile over M
            pl.BlockSpec((Kp, tn), lambda i, j: (0, j)),   # weight: resident when tn == Ep
            pl.BlockSpec((1, tn), lambda i, j: (0, j)),    # bias: resident per E-tile
        ],
        out_specs=pl.BlockSpec((tm, tn), lambda i, j: (i, j)),
        compiler_params=pltpu.CompilerParams(
            dimension_semantics=("parallel", "parallel"),
            vmem_limit_bytes=vmem_limit,
        ),
        cost_estimate=cost,
    )(xp, w2, b2)

    return out[:M, :E].reshape(B, P, E)


if __name__ == "__main__":
    # Small, consistent shapes: img_size=16, patch_size=8, in_chans=4, embed_dim=32
    B, C, H, W = 2, 4, 16, 16
    ph, pw = 8, 8
    E = 32

    key = jax.random.PRNGKey(0)
    kx, kw, kb = jax.random.split(key, 3)
    x = jax.random.normal(kx, (B, C, H, W), dtype=jnp.float32)
    weight = jax.random.normal(kw, (E, C, ph, pw), dtype=jnp.float32) * 0.02
    bias = jax.random.normal(kb, (E,), dtype=jnp.float32) * 0.02

    out = aud_patch_embed(x, weight, bias, (ph, pw))
    out = jax.block_until_ready(out)

    # Reference: plain-JAX (f32) equivalent of Conv2d(stride=kernel) + flatten + transpose
    xp = x.reshape(B, C, H // ph, ph, W // pw, pw).transpose(0, 2, 4, 1, 3, 5)
    xp = xp.reshape(B * (H // ph) * (W // pw), C * ph * pw)
    ref = (xp @ weight.reshape(E, -1).T + bias).reshape(B, -1, E)

    assert out.shape == (B, (H // ph) * (W // pw), E)
    # bf16 MXU inputs (f32 accumulate) -> compare against the f32 reference with a
    # tolerance covering bf16 input rounding over the K=256 reduction.
    np.testing.assert_allclose(np.asarray(out), np.asarray(ref), rtol=2e-2, atol=2e-2)
    print("KERNEL_OK")
</pallas_src>

<mosaic_0001>
module attributes {stable_mosaic.version = 11 : i64} {
  func.func @_patch_embed_kernel(%arg0: i32, %arg1: i32, %arg2: memref<8x256xbf16, #tpu.memory_space<vmem>>, %arg3: memref<256x128xbf16, #tpu.memory_space<vmem>>, %arg4: memref<1x128xf32, #tpu.memory_space<vmem>>, %arg5: memref<8x128xf32, #tpu.memory_space<vmem>>) attributes {dimension_semantics = [#tpu.dimension_semantics<parallel>, #tpu.dimension_semantics<parallel>], iteration_bounds = array<i64: 1, 1>, scalar_prefetch = 0 : i64, scratch_operands = 0 : i64, tpu.core_type = #tpu.core_type<tc>, window_params = [{transform_indices = @transform_0, window_bounds = array<i64: 8, 256>}, {transform_indices = @transform_1, window_bounds = array<i64: 256, 128>}, {transform_indices = @transform_2, window_bounds = array<i64: 1, 128>}, {transform_indices = @transform_3, window_bounds = array<i64: 8, 128>}]} {
    %c0 = arith.constant 0 : index
    %c0_0 = arith.constant 0 : index
    %0 = vector.load %arg2[%c0, %c0_0] : memref<8x256xbf16, #tpu.memory_space<vmem>>, vector<8x256xbf16>
    %c0_1 = arith.constant 0 : index
    %c0_2 = arith.constant 0 : index
    %1 = vector.load %arg3[%c0_1, %c0_2] : memref<256x128xbf16, #tpu.memory_space<vmem>>, vector<256x128xbf16>
    %cst = arith.constant dense<0.000000e+00> : vector<8x128xf32>
    %2 = tpu.matmul %0, %1, %cst {dimension_numbers = #tpu.dot_dimension_numbers<[1], [0], [0], [1], [0, 0, 1, 1], [], []>} : vector<8x256xbf16>, vector<256x128xbf16>, vector<8x128xf32> -> vector<8x128xf32>
    %c0_3 = arith.constant 0 : index
    %c0_4 = arith.constant 0 : index
    %3 = vector.load %arg4[%c0_3, %c0_4] : memref<1x128xf32, #tpu.memory_space<vmem>>, vector<1x128xf32>
    %4 = vector.broadcast %3 : vector<1x128xf32> to vector<8x128xf32>
    %5 = arith.addf %2, %4 : vector<8x128xf32>
    %c0_5 = arith.constant 0 : index
    %c0_6 = arith.constant 0 : index
    %6 = vector.load %arg5[%c0_5, %c0_6] : memref<8x128xf32, #tpu.memory_space<vmem>>, vector<8x128xf32>
    tpu.vector_store %arg5[%c0_5, %c0_6], %5 {strides = array<i32>} : memref<8x128xf32, #tpu.memory_space<vmem>>, vector<8x128xf32>,
    return
  }
  func.func @transform_0(%arg0: i32, %arg1: i32) -> (i32, i32) {
    %c0_i32 = arith.constant 0 : i32
    %c0_i32_0 = arith.constant 0 : i32
    return %arg0, %c0_i32 : i32, i32
  }
  func.func @transform_1(%arg0: i32, %arg1: i32) -> (i32, i32) {
    %c0_i32 = arith.constant 0 : i32
    %c0_i32_0 = arith.constant 0 : i32
    return %c0_i32, %arg1 : i32, i32
  }
  func.func @transform_2(%arg0: i32, %arg1: i32) -> (i32, i32) {
    %c0_i32 = arith.constant 0 : i32
    %c0_i32_0 = arith.constant 0 : i32
    return %c0_i32, %arg1 : i32, i32
  }
  func.func @transform_3(%arg0: i32, %arg1: i32) -> (i32, i32) {
    %c0_i32 = arith.constant 0 : i32
    return %arg0, %arg1 : i32, i32
  }
}

</mosaic_0001>

<bundles_post_ra>
// kernel: aud_patch_embed.1
= control target key start
LH: loop header
LB: loop body
LE: loop exit
PB: predicated region body
PF: predicated region fallthrough
CT: control target
= control target key end

     0   :  { %s384_s0 = inlined_call_operand.vmem [shape: bf16[8,256], index: 0, kind: input, shape index: {}]   ;;  %s385_s1 = inlined_call_operand.vmem [shape: bf16[256,128], index: 1, kind: input, shape index: {}]   ;;  %s386_s2 = inlined_call_operand.vmem [shape: f32[1,128], index: 2, kind: input, shape index: {}]   ;;  %s387_s3 = inlined_call_operand.hbm [shape: f32[8,128], index: 3, kind: output, shape index: {}]  }
   0x1   :  { %v269_v0 = vld [vmem:[%s385_s1 + $0x38] sm:$0xff]  ;;  %v268_v2 = vld [vmem:[%s385_s1 + $0x30] sm:$0xff]  ;;  %v267_v4 = vld [vmem:[%s385_s1 + $0x28] sm:$0xff] }
   0x2   :  { %v277_v1 = vld [vmem:[%s385_s1 + $0x78] sm:$0xff]  ;;  %155 = vmatpush.bf16.msra.mxu0 %v269_v0  ;;  %v276_v3 = vld [vmem:[%s385_s1 + $0x70] sm:$0xff]  ;;  %v275_v5 = vld [vmem:[%s385_s1 + $0x68] sm:$0xff] }
   0x3   :  { %168 = vmatpush.bf16.msra.mxu1 %v277_v1 }
   0x6   :  { %156 = vmatpush.bf16.msra.mxu0 %v268_v2 }
   0x7   :  { %169 = vmatpush.bf16.msra.mxu1 %v276_v3 }
   0x8   :  { %8 = vsyncpa [#allocation3], 0  ;;  %v266_v6 = vld [vmem:[%s385_s1 + $0x20] sm:$0xff]  ;;  %v265_v8 = vld [vmem:[%s385_s1 + $0x18] sm:$0xff]  ;;  %s306_s20 = smov [#allocation2]   ;;  %s189_s24 = sshll.u32 %s387_s3, 4  ;;  %s190_s24 = int_to_ptr.hbm [resolvable:$true] %s189_s24 }
   0x9   :  { %v274_v7 = vld [vmem:[%s385_s1 + $0x60] sm:$0xff]  ;;  %v273_v9 = vld [vmem:[%s385_s1 + $0x58] sm:$0xff]  ;;  %v264_v10 = vld [vmem:[%s385_s1 + $0x10] sm:$0xff]  ;;  %s187_s21 = sshll.u32 %s306_s20, 4  ;;  %s188_s21 = int_to_ptr.vmem [resolvable:$true] %s187_s21 }
   0xa   :  { %157 = vmatpush.bf16.msra.mxu0 %v267_v4  ;;  %v272_v11 = vld [vmem:[%s385_s1 + $0x50] sm:$0xff]  ;;  %v263_v12 = vld [vmem:[%s385_s1 + $0x8] sm:$0xff]  ;;  %v15_v14 = vld [vmem:[%s384_s0] sm:$0xff] }
   0xb   :  { %170 = vmatpush.bf16.msra.mxu1 %v275_v5  ;;  %v271_v13 = vld [vmem:[%s385_s1 + $0x48] sm:$0xff]  ;;  %v53_v15 = vunpack.c.l.b16 %v15_v14  ;;  %v54_v16 = vunpack.c.h.b16 %v15_v14  ;;  %v262_v17 = vld [vmem:[%s385_s1] sm:$0xff] }
   0xc   :  { %v270_v18 = vld [vmem:[%s385_s1 + $0x40] sm:$0xff] }
   0xd   :  { %v55_v19 = vpack.c.b16 %v53_v15, %v53_v15  ;;  %v56_v20 = vpack.c.b16 %v54_v16, %v54_v16  ;;  %v279_v21 = vld [vmem:[%s386_s2] ss:$0 sm:$0xff] }
   0xe   :  { %158 = vmatpush.bf16.msra.mxu0 %v266_v6 }
   0xf   :  { %171 = vmatpush.bf16.msra.mxu1 %v274_v7 }
  0x12   :  { %159 = vmatpush.bf16.msra.mxu0 %v265_v8 }
  0x13   :  { %172 = vmatpush.bf16.msra.mxu1 %v273_v9 }
  0x16   :  { %160 = vmatpush.bf16.msra.mxu0 %v264_v10 }
  0x17   :  { %173 = vmatpush.bf16.msra.mxu1 %v272_v11 }
  0x1a   :  { %161 = vmatpush.bf16.msra.mxu0 %v263_v12 }
  0x1b   :  { %174 = vmatpush.bf16.msra.mxu1 %v271_v13 }
  0x1e   :  { %162 = vmatpush.bf16.msra.mxu0 %v262_v17 }
  0x1f   :  { %175 = vmatpush.bf16.msra.mxu1 %v270_v18 }
  0x21   :  { %163 = vmatmul.bf16.vlgmr.msra.gmra.mxu0 %v55_v19 }
  0x22   :  { %176 = vmatmul.bf16.vlgmr.msra.gmra.mxu1 %v56_v20 }
  0x9e   :  { %v164_v22 = vpop.f32.mrf.mxu0 }
  0x9f   :  { %v177_v23 = vpop.f32.mrf.mxu1  ;;  %v165_v24 = vadd.f32 %v279_v21, %v164_v22 }
  0xa1   :  { %v178_v25 = vadd.f32 %v177_v23, %v165_v24 }
  0xa3   :  { %181 = vst [vmem:[#allocation2] sm:$0xff] %v178_v25 }
  0xa4   :  { %192 = dma.vmem_to_hbm [thread:$0]  %s188_s21, 128, %s190_s24, [#allocation3]  }
  0xa6   :  { %v166_v26 = vpop.f32.mrf.mxu0 }
  0xa7   :  { %v179_v27 = vpop.f32.mrf.mxu1 }
  0xa8   :  { %304 = dma.done.wait [#allocation3], 128  }
  0xa9   :  { %305 = vsyncadd [#allocation3], 4294967168 }
  0xaa   :  { %197 = vsyncpa [#allocation3], 1 }

</bundles_post_ra>
